<compile_context>
chip_gen: v6e
topology: v6e:2x2x1
jax: 0.10.0
libtpu: 0.0.40
codegen_flags: <defaults>
</compile_context>

<pallas_src>
import jax
import jax.numpy as jnp
from jax.experimental import pallas as pl
from jax.experimental.pallas import tpu as pltpu

# ---- static problem configuration (small shapes, module defaults) -------------
B = 2            # batch
N = 8            # number of nodes -> x is (B, N, N) pairwise values
K = 128          # number of gaussian kernels (module default)
E = 1024         # number of edge types (module default)

PI = 3.14159                      # matches the torch.jit.script constant
A_CONST = (2.0 * PI) ** 0.5       # sqrt(2*pi)
INV_A = 1.0 / A_CONST
SQRT_HALF = 0.5 ** 0.5


def _gaussian_kernel(xmb_ref, ms_ref, o_ref):
    """Single-shot kernel over the whole flattened problem.

    xmb_ref: (R, 3) f32  columns = [x, mul(edge_type), bias(edge_type)]
    ms_ref : (2, K) f32  row 0 = means, row 1 = stds
    o_ref  : (R, K) f32  lane-dense output (K on lanes -> unmasked stores)
    """
    xmb = xmb_ref[...]                                   # (R, 3)
    x = xmb[:, 0:1]
    mul = xmb[:, 1:2]
    bias = xmb[:, 2:3]
    y = mul * x + bias                                   # (R, 1)

    mean = ms_ref[0:1, :]                                # (1, K)
    std = jnp.abs(ms_ref[1:2, :]) + 1e-5                 # (1, K)
    inv_std = pl.reciprocal(std)                         # exact, (1, K) only
    half_inv = inv_std * SQRT_HALF                       # folds the -0.5
    coef = inv_std * INV_A                               # folds 1/(sqrt(2*pi))

    z = (y - mean) * half_inv                            # (R, K) broadcast
    o_ref[...] = jnp.exp(-(z * z)) * coef                # lane-dense store


@jax.jit
def gaussian_layer_pallas(x, edge_types, mul_w, bias_w, means_w, stds_w):
    """x: (B, N, N) f32, edge_types: (B, N, N) int32,
    mul_w/bias_w: (E, 1) f32, means_w/stds_w: (1, K) f32 -> (B, N, N, K) f32."""
    b, n, _ = x.shape
    r = b * n * n
    k = means_w.shape[1]

    # Scalar embedding gather hoisted to the wrapper (structural gather, not
    # compute): 128 lookups into a (1024, 1) table. All the Gaussian math
    # stays in the kernel.
    et = edge_types.reshape(r)
    mul = mul_w[et].astype(jnp.float32)                  # (R, 1)
    bias = bias_w[et].astype(jnp.float32)                # (R, 1)

    # Layout plumbing: one packed per-row input and one packed (2, K) params row.
    xmb = jnp.concatenate(
        [x.reshape(r, 1).astype(jnp.float32), mul, bias], axis=1)        # (R, 3)
    ms = jnp.concatenate([means_w, stds_w], axis=0).astype(jnp.float32)  # (2, K)

    out = pl.pallas_call(
        _gaussian_kernel,
        out_shape=jax.ShapeDtypeStruct((r, k), jnp.float32),
        in_specs=[
            pl.BlockSpec(memory_space=pltpu.MemorySpace.VMEM),
            pl.BlockSpec(memory_space=pltpu.MemorySpace.VMEM),
        ],
        out_specs=pl.BlockSpec(memory_space=pltpu.MemorySpace.VMEM),
    )(xmb, ms)

    return out.reshape(b, n, n, k)


def _reference(x, edge_types, mul_w, bias_w, means_w, stds_w):
    """Pure-JAX reference mirroring the PyTorch forward."""
    mul = mul_w[edge_types]                     # (B, N, N, 1)
    bias = bias_w[edge_types]                   # (B, N, N, 1)
    y = mul * x[..., None] + bias               # (B, N, N, 1)
    y = jnp.broadcast_to(y, y.shape[:-1] + (K,))
    mean = means_w.reshape(-1)                  # (K,)
    std = jnp.abs(stds_w.reshape(-1)) + 1e-5    # (K,)
    return jnp.exp(-0.5 * ((y - mean) / std) ** 2) / (A_CONST * std)


if __name__ == "__main__":
    key = jax.random.PRNGKey(0)
    k_means, k_stds, k_mul, k_bias, k_x, k_et = jax.random.split(key, 6)

    # Embedding parameters (means/stds per module init; mul/bias perturbed from
    # their 1/0 init so the gather path is actually exercised).
    means_w = jax.random.uniform(k_means, (1, K), jnp.float32, 0.0, 3.0)
    stds_w = jax.random.uniform(k_stds, (1, K), jnp.float32, 0.0, 3.0)
    mul_w = 1.0 + 0.1 * jax.random.normal(k_mul, (E, 1), jnp.float32)
    bias_w = 0.1 * jax.random.normal(k_bias, (E, 1), jnp.float32)

    # Inputs: pairwise values and integer edge types.
    x = jax.random.uniform(k_x, (B, N, N), jnp.float32, 0.0, 3.0)
    edge_types = jax.random.randint(k_et, (B, N, N), 0, E, jnp.int32)

    out = gaussian_layer_pallas(x, edge_types, mul_w, bias_w, means_w, stds_w)
    out = jax.block_until_ready(out)

    ref = _reference(x, edge_types, mul_w, bias_w, means_w, stds_w)
    assert out.shape == (B, N, N, K)
    assert bool(jnp.allclose(out, ref, rtol=1e-4, atol=1e-4)), "mismatch vs reference"

    print("KERNEL_OK")
</pallas_src>

<mosaic_0001>
module attributes {stable_mosaic.version = 11 : i64} {
  func.func @_gaussian_kernel(%arg0: memref<128x3xf32, #tpu.memory_space<vmem>>, %arg1: memref<2x128xf32, #tpu.memory_space<vmem>>, %arg2: memref<128x128xf32, #tpu.memory_space<vmem>>) attributes {dimension_semantics = [], scalar_prefetch = 0 : i64, scratch_operands = 0 : i64, tpu.core_type = #tpu.core_type<tc>} {
    %c0 = arith.constant 0 : index
    %c0_0 = arith.constant 0 : index
    %0 = vector.load %arg0[%c0, %c0_0] : memref<128x3xf32, #tpu.memory_space<vmem>>, vector<128x3xf32>
    %1 = vector.extract_strided_slice %0 {offsets = [0, 0], sizes = [128, 1], strides = [1, 1]} : vector<128x3xf32> to vector<128x1xf32>
    %2 = vector.extract_strided_slice %0 {offsets = [0, 1], sizes = [128, 1], strides = [1, 1]} : vector<128x3xf32> to vector<128x1xf32>
    %3 = vector.extract_strided_slice %0 {offsets = [0, 2], sizes = [128, 1], strides = [1, 1]} : vector<128x3xf32> to vector<128x1xf32>
    %4 = arith.mulf %2, %1 : vector<128x1xf32>
    %5 = arith.addf %4, %3 : vector<128x1xf32>
    %c0_1 = arith.constant 0 : index
    %c0_2 = arith.constant 0 : index
    %6 = vector.load %arg1[%c0_1, %c0_2] : memref<2x128xf32, #tpu.memory_space<vmem>>, vector<1x128xf32>
    %c1 = arith.constant 1 : index
    %c0_3 = arith.constant 0 : index
    %7 = vector.load %arg1[%c1, %c0_3] : memref<2x128xf32, #tpu.memory_space<vmem>>, vector<1x128xf32>
    %8 = math.absf %7 : vector<1x128xf32>
    %cst = arith.constant 9.99999974E-6 : f32
    %9 = vector.broadcast %cst : f32 to vector<1x128xf32>
    %10 = arith.addf %8, %9 : vector<1x128xf32>
    %11 = tpu.reciprocal %10 : vector<1x128xf32> -> vector<1x128xf32>
    %cst_4 = arith.constant 0.707106769 : f32
    %12 = vector.broadcast %cst_4 : f32 to vector<1x128xf32>
    %13 = arith.mulf %11, %12 : vector<1x128xf32>
    %cst_5 = arith.constant 0.398942441 : f32
    %14 = vector.broadcast %cst_5 : f32 to vector<1x128xf32>
    %15 = arith.mulf %11, %14 : vector<1x128xf32>
    %16 = vector.broadcast %5 : vector<128x1xf32> to vector<128x128xf32>
    %17 = vector.broadcast %6 : vector<1x128xf32> to vector<128x128xf32>
    %18 = arith.subf %16, %17 : vector<128x128xf32>
    %19 = vector.broadcast %13 : vector<1x128xf32> to vector<128x128xf32>
    %20 = arith.mulf %18, %19 : vector<128x128xf32>
    %21 = arith.mulf %20, %20 : vector<128x128xf32>
    %cst_6 = arith.constant 0.000000e+00 : f32
    %22 = vector.broadcast %cst_6 : f32 to vector<128x128xf32>
    %23 = arith.subf %22, %21 : vector<128x128xf32>
    %24 = math.exp %23 : vector<128x128xf32>
    %25 = vector.broadcast %15 : vector<1x128xf32> to vector<128x128xf32>
    %26 = arith.mulf %24, %25 : vector<128x128xf32>
    %c0_7 = arith.constant 0 : index
    %c0_8 = arith.constant 0 : index
    %27 = vector.load %arg2[%c0_7, %c0_8] : memref<128x128xf32, #tpu.memory_space<vmem>>, vector<128x128xf32>
    tpu.vector_store %arg2[%c0_7, %c0_8], %26 {strides = array<i32>} : memref<128x128xf32, #tpu.memory_space<vmem>>, vector<128x128xf32>,
    return
  }
}

</mosaic_0001>

<bundles_post_ra>
// kernel: gaussian_layer_pallas.1
= control target key start
LH: loop header
LB: loop body
LE: loop exit
PB: predicated region body
PF: predicated region fallthrough
CT: control target
= control target key end

     0   :  { %s480_s13 = smov 1   ;;  %s711_s0 = inlined_call_operand.vmem [shape: f32[128,3], index: 0, kind: input, shape index: {}]   ;;  %s712_s1 = inlined_call_operand.vmem [shape: f32[2,128], index: 1, kind: input, shape index: {}]   ;;  %s713_s2 = inlined_call_operand.hbm [shape: f32[128,128], index: 2, kind: output, shape index: {}]  }
   0x1   :  { %v504_v0 = vld [vmem:[%s711_s0 + $0x10] sm:$0xff]  ;;  %v509_v1 = vld [vmem:[%s711_s0] sm:$0xff]  ;;  %v518_v2 = vld [vmem:[%s711_s0 + $0x18] sm:$0xff] }
   0x2   :  { %48 = vrot.lane.b32.xlu1 %v504_v0, %s480_s13  ;;  %44 = vrot.lane.b32.xlu0 %v509_v1, %s480_s13  ;;  %v523_v3 = vld [vmem:[%s711_s0 + $0x8] sm:$0xff]  ;;  %v537_v5 = vld [vmem:[%s711_s0 + $0x20] sm:$0xff] }
   0x3   :  { %v532_v4 = vld [vmem:[%s711_s0 + $0x28] sm:$0xff] }
   0x6   :  { %50 = vrot.lane.b32.xlu1 %v518_v2, %s480_s13  ;;  %46 = vrot.lane.b32.xlu0 %v523_v3, %s480_s13 }
   0x7   :  { %7 = vsyncpa [#allocation3], 0  ;;  %v546_v6 = vld [vmem:[%s711_s0 + $0x38] sm:$0xff]  ;;  %v551_v7 = vld [vmem:[%s711_s0 + $0x30] sm:$0xff]  ;;  %v481_v14 = vmov 1   ;;  %s482_s15 = smov 127  }
   0x8   :  { %v560_v8 = vld [vmem:[%s711_s0 + $0x48] sm:$0xff]  ;;  %v565_v9 = vld [vmem:[%s711_s0 + $0x40] sm:$0xff]  ;;  %v574_v10 = vld [vmem:[%s711_s0 + $0x58] sm:$0xff]  ;;  %423 = vset.pattern.permute.xlu1 %v481_v14  ;;  %422 = vset.pattern.permute.xlu0 %v481_v14 }
   0x9   :  { %v579_v11 = vld [vmem:[%s711_s0 + $0x50] sm:$0xff]  ;;  %v588_v12 = vld [vmem:[%s711_s0 + $0x68] sm:$0xff]  ;;  %v593_v13 = vld [vmem:[%s711_s0 + $0x60] sm:$0xff] }
   0xa   :  { %54 = vrot.lane.b32.xlu1 %v532_v4, %s480_s13  ;;  %52 = vrot.lane.b32.xlu0 %v537_v5, %s480_s13  ;;  %v602_v15 = vld [vmem:[%s711_s0 + $0x78] sm:$0xff]  ;;  %v607_v16 = vld [vmem:[%s711_s0 + $0x70] sm:$0xff] }
   0xe   :  { %58 = vrot.lane.b32.xlu1 %v546_v6, %s480_s13  ;;  %56 = vrot.lane.b32.xlu0 %v551_v7, %s480_s13 }
  0x12   :  { %62 = vrot.lane.b32.xlu1 %v560_v8, %s480_s13  ;;  %60 = vrot.lane.b32.xlu0 %v565_v9, %s480_s13 }
  0x16   :  { %66 = vrot.lane.b32.xlu1 %v574_v10, %s480_s13  ;;  %64 = vrot.lane.b32.xlu0 %v579_v11, %s480_s13 }
  0x1a   :  { %70 = vrot.lane.b32.xlu1 %v588_v12, %s480_s13  ;;  %68 = vrot.lane.b32.xlu0 %v593_v13, %s480_s13 }
  0x1e   :  { %74 = vrot.lane.b32.xlu1 %v602_v15, %s480_s13  ;;  %72 = vrot.lane.b32.xlu0 %v607_v16, %s480_s13 }
  0x22   :  { %110 = vrot.lane.b32.xlu1 %v523_v3, %s482_s15  ;;  %108 = vrot.lane.b32.xlu0 %v509_v1, %s482_s15 }
  0x26   :  { %114 = vrot.lane.b32.xlu1 %v518_v2, %s482_s15  ;;  %112 = vrot.lane.b32.xlu0 %v504_v0, %s482_s15 }
  0x2a   :  { %118 = vrot.lane.b32.xlu1 %v532_v4, %s482_s15  ;;  %116 = vrot.lane.b32.xlu0 %v537_v5, %s482_s15 }
  0x2e   :  { %122 = vrot.lane.b32.xlu1 %v546_v6, %s482_s15  ;;  %120 = vrot.lane.b32.xlu0 %v551_v7, %s482_s15 }
  0x32   :  { %126 = vrot.lane.b32.xlu1 %v560_v8, %s482_s15  ;;  %124 = vrot.lane.b32.xlu0 %v565_v9, %s482_s15 }
  0x36   :  { %130 = vrot.lane.b32.xlu1 %v574_v10, %s482_s15  ;;  %128 = vrot.lane.b32.xlu0 %v579_v11, %s482_s15 }
  0x3a   :  { %134 = vrot.lane.b32.xlu1 %v588_v12, %s482_s15  ;;  %132 = vrot.lane.b32.xlu0 %v593_v13, %s482_s15 }
  0x3e   :  { %138 = vrot.lane.b32.xlu1 %v602_v15, %s482_s15  ;;  %136 = vrot.lane.b32.xlu0 %v607_v16, %s482_s15 }
  0x74   :  { %v49_v17 = vpop.permute.xlu1 %48  ;;  %v45_v18 = vpop.permute.xlu0 %44 }
  0x75   :  { %v92_v33 = vmul.f32 %v45_v18, %v509_v1  ;;  %v94_v39 = vmul.f32 %v49_v17, %v504_v0 }
  0x78   :  { %v51_v19 = vpop.permute.xlu1 %50  ;;  %v47_v20 = vpop.permute.xlu0 %46 }
  0x79   :  { %v93_v34 = vmul.f32 %v47_v20, %v523_v3  ;;  %v95_v40 = vmul.f32 %v51_v19, %v518_v2 }
  0x7c   :  { %v55_v21 = vpop.permute.xlu1 %54  ;;  %v53_v22 = vpop.permute.xlu0 %52 }
  0x7d   :  { %v97_v45 = vmul.f32 %v55_v21, %v532_v4  ;;  %v96_v46 = vmul.f32 %v53_v22, %v537_v5  ;;  %v279_v22 = vlaneseq }
  0x80   :  { %v59_v23 = vpop.permute.xlu1 %58  ;;  %v57_v24 = vpop.permute.xlu0 %56 }
  0x81   :  { %v99_v51 = vmul.f32 %v59_v23, %v546_v6  ;;  %v98_v52 = vmul.f32 %v57_v24, %v551_v7  ;;  %v648_v23 = vshrl.u32 %v279_v22, 7 }
  0x83   :  { %v281_v24 = vsub.s32 0, %v648_v23 }
  0x84   :  { %v63_v25 = vpop.permute.xlu1 %62  ;;  %v61_v26 = vpop.permute.xlu0 %60 }
  0x85   :  { %v101_v57 = vmul.f32 %v63_v25, %v560_v8  ;;  %v100_v58 = vmul.f32 %v61_v26, %v565_v9  ;;  %v654_v25 = vld [vmem:[%s712_s1] ss:$0 sm:$0xff] }
  0x88   :  { %v67_v27 = vpop.permute.xlu1 %66  ;;  %v65_v28 = vpop.permute.xlu0 %64 }
  0x89   :  { %v103_v63 = vmul.f32 %v67_v27, %v574_v10  ;;  %v102_v0 = vmul.f32 %v65_v28, %v579_v11 }
  0x8c   :  { %v71_v29 = vpop.permute.xlu1 %70  ;;  %v69_v30 = vpop.permute.xlu0 %68 }
  0x8d   :  { %v105_v5 = vmul.f32 %v71_v29, %v588_v12  ;;  %v104_v6 = vmul.f32 %v69_v30, %v593_v13  ;;  %v173_v12 = vld [vmem:[%s712_s1 + $0x1] sm:$0x1]  ;;  %s483_s1 = smov [#allocation2]  }
  0x8e   :  { %v174_v13 = vand.u32 2147483647, %v173_v12  ;;  %s404_s18 = sshll.u32 %s483_s1, 4  ;;  %s405_s18 = int_to_ptr.vmem [resolvable:$true] %s404_s18 }
  0x8f   :  { %s458_s19 = scalar_lea.vmem %s405_s18, 2048  ;;  %p463_p1 = scmp.lt.s32.totalorder %s405_s18, %s405_s18 }
  0x90   :  { %v75_v31 = vpop.permute.xlu1 %74  ;;  %v73_v32 = vpop.permute.xlu0 %72  ;;  %v175_v21 = vadd.f32 1e-05, %v174_v13  ;;  %p459_p0 = scmp.ne.s32.totalorder %s405_s18, %s458_s19  ;;  %p464_p2 = scmp.lt.s32.totalorder %s458_s19, %s458_s19 }
  0x91   :  { %v107_v10 = vmul.f32 %v75_v31, %v602_v15  ;;  %v106_v11 = vmul.f32 %v73_v32, %v607_v16 }
  0x92   :  { %424 = vrcp.f32 %v175_v21  ;;  %p465_p3 = por %p464_p2, %p463_p1 }
  0x94   :  { %v111_v35 = vpop.permute.xlu1 %110  ;;  %v109_v36 = vpop.permute.xlu0 %108  ;;  %p466_p4 = pnand %p465_p3, %p459_p0 }
  0x95   :  { %v157_v37 = vadd.f32 %v111_v35, %v93_v34  ;;  %v156_v38 = vadd.f32 %v109_v36, %v92_v33 }
  0x97   :  { %186 = vperm.xlu1 %423, %v157_v37   ;;  %181 = vperm.xlu0 %422, %v156_v38  }
  0x98   :  { %v115_v41 = vpop.permute.xlu1 %114  ;;  %v113_v42 = vpop.permute.xlu0 %112 }
  0x99   :  { %v159_v43 = vadd.f32 %v115_v41, %v95_v40  ;;  %v158_v44 = vadd.f32 %v113_v42, %v94_v39 }
  0x9b   :  { %196 = vperm.xlu0 %422, %v159_v43   ;;  %191 = vperm.xlu1 %423, %v158_v44  }
  0x9c   :  { %v119_v47 = vpop.permute.xlu1 %118  ;;  %v117_v48 = vpop.permute.xlu0 %116 }
  0x9d   :  { %v161_v49 = vadd.f32 %v119_v47, %v97_v45  ;;  %v160_v50 = vadd.f32 %v117_v48, %v96_v46 }
  0x9f   :  { %206 = vperm.xlu0 %422, %v161_v49   ;;  %201 = vperm.xlu1 %423, %v160_v50   ;;  %v425_v15 = vpop.eup %424 }
  0xa0   :  { %v123_v53 = vpop.permute.xlu1 %122  ;;  %v121_v54 = vpop.permute.xlu0 %120  ;;  %v177_v16 = vmul.f32 0.70710677, %v425_v15 }
  0xa1   :  { %v163_v55 = vadd.f32 %v123_v53, %v99_v51  ;;  %v162_v56 = vadd.f32 %v121_v54, %v98_v52 }
  0xa2   :  { %v656_v26 = vrot.slane %v177_v16, %v281_v24 }
  0xa3   :  { %216 = vperm.xlu0 %422, %v163_v55   ;;  %211 = vperm.xlu1 %423, %v162_v56  }
  0xa4   :  { %v127_v59 = vpop.permute.xlu1 %126  ;;  %v125_v60 = vpop.permute.xlu0 %124 }
  0xa5   :  { %v165_v61 = vadd.f32 %v127_v59, %v101_v57  ;;  %v164_v62 = vadd.f32 %v125_v60, %v100_v58 }
  0xa7   :  { %226 = vperm.xlu0 %422, %v165_v61   ;;  %221 = vperm.xlu1 %423, %v164_v62  }
  0xa8   :  { %v131_v1 = vpop.permute.xlu1 %130  ;;  %v129_v2 = vpop.permute.xlu0 %128 }
  0xa9   :  { %v167_v3 = vadd.f32 %v131_v1, %v103_v63  ;;  %v166_v4 = vadd.f32 %v129_v2, %v102_v0  ;;  %v178_v1 = vmul.f32 0.39894244, %v425_v15 }
  0xab   :  { %236 = vperm.xlu0 %422, %v167_v3   ;;  %231 = vperm.xlu1 %423, %v166_v4  }
  0xac   :  { %v135_v7 = vpop.permute.xlu1 %134  ;;  %v133_v8 = vpop.permute.xlu0 %132 }
  0xad   :  { %v169_v9 = vadd.f32 %v135_v7, %v105_v5  ;;  %v168_v14 = vadd.f32 %v133_v8, %v104_v6 }
  0xaf   :  { %246 = vperm.xlu0 %422, %v169_v9   ;;  %241 = vperm.xlu1 %423, %v168_v14  }
  0xb0   :  { %v139_v17 = vpop.permute.xlu1 %138  ;;  %v137_v18 = vpop.permute.xlu0 %136 }
  0xb1   :  { %v171_v19 = vadd.f32 %v139_v17, %v107_v10  ;;  %v170_v20 = vadd.f32 %v137_v18, %v106_v11 }
  0xb3   :  { %256 = vperm.xlu0 %422, %v171_v19   ;;  %251 = vperm.xlu1 %423, %v170_v20   ;;  %v678_v20 = vrot.slane %v178_v1, %v281_v24 }
 0x112   :  { %v187_v27 = vpop.permute.xlu1 %186  ;;  %v182_v28 = vpop.permute.xlu0 %181 }
 0x113   :  { %v264_v29 = vsub.f32 %v187_v27, %v654_v25  ;;  %v263_v30 = vsub.f32 %v182_v28, %v654_v25 }
 0x115   :  { %v284_v31 = vmul.f32 %v656_v26, %v264_v29  ;;  %v283_v32 = vmul.f32 %v656_v26, %v263_v30 }
 0x116   :  { %v192_v33 = vpop.permute.xlu1 %191  ;;  %v197_v34 = vpop.permute.xlu0 %196 }
 0x117   :  { %v300_v35 = vmul.f32 %v284_v31, %v284_v31  ;;  %v299_v36 = vmul.f32 %v283_v32, %v283_v32  ;;  %v265_v37 = vsub.f32 %v192_v33, %v654_v25  ;;  %v266_v38 = vsub.f32 %v197_v34, %v654_v25 }
 0x119   :  { %v316_v39 = vsub.f32 0.0, %v300_v35  ;;  %v315_v40 = vsub.f32 0.0, %v299_v36  ;;  %v285_v41 = vmul.f32 %v656_v26, %v265_v37  ;;  %v286_v42 = vmul.f32 %v656_v26, %v266_v38 }
 0x11a   :  { %v202_v43 = vpop.permute.xlu1 %201  ;;  %v207_v44 = vpop.permute.xlu0 %206 }
 0x11b   :  { %v333_v45 = vmul.f32 1.442695, %v316_v39  ;;  %v331_v46 = vmul.f32 1.442695, %v315_v40  ;;  %v301_v47 = vmul.f32 %v285_v41, %v285_v41  ;;  %v302_v48 = vmul.f32 %v286_v42, %v286_v42 }
 0x11c   :  { %v267_v49 = vsub.f32 %v202_v43, %v654_v25  ;;  %v268_v50 = vsub.f32 %v207_v44, %v654_v25 }
 0x11d   :  { %426 = vpow2.f32 %v333_v45  ;;  %v317_v51 = vsub.f32 0.0, %v301_v47  ;;  %v318_v52 = vsub.f32 0.0, %v302_v48 }
 0x11e   :  { %428 = vpow2.f32 %v331_v46  ;;  %v287_v53 = vmul.f32 %v656_v26, %v267_v49  ;;  %v288_v54 = vmul.f32 %v656_v26, %v268_v50  ;;  %v212_v55 = vpop.permute.xlu1 %211  ;;  %v217_v56 = vpop.permute.xlu0 %216 }
 0x11f   :  { %v335_v57 = vmul.f32 1.442695, %v317_v51  ;;  %v337_v58 = vmul.f32 1.442695, %v318_v52  ;;  %v269_v59 = vsub.f32 %v212_v55, %v654_v25  ;;  %v270_v60 = vsub.f32 %v217_v56, %v654_v25 }
 0x120   :  { %v303_v61 = vmul.f32 %v287_v53, %v287_v53  ;;  %v304_v62 = vmul.f32 %v288_v54, %v288_v54 }
 0x121   :  { %430 = vpow2.f32 %v335_v57  ;;  %v289_v63 = vmul.f32 %v656_v26, %v269_v59  ;;  %v290_v0 = vmul.f32 %v656_v26, %v270_v60 }
 0x122   :  { %432 = vpow2.f32 %v337_v58  ;;  %v319_v2 = vsub.f32 0.0, %v303_v61  ;;  %v320_v3 = vsub.f32 0.0, %v304_v62  ;;  %v222_v4 = vpop.permute.xlu1 %221  ;;  %v227_v5 = vpop.permute.xlu0 %226 }
 0x123   :  { %v305_v6 = vmul.f32 %v289_v63, %v289_v63  ;;  %v306_v7 = vmul.f32 %v290_v0, %v290_v0  ;;  %v271_v8 = vsub.f32 %v222_v4, %v654_v25  ;;  %v272_v9 = vsub.f32 %v227_v5, %v654_v25 }
 0x124   :  { %v339_v14 = vmul.f32 1.442695, %v319_v2  ;;  %v341_v10 = vmul.f32 1.442695, %v320_v3 }
 0x125   :  { %v321_v11 = vsub.f32 0.0, %v305_v6  ;;  %v322_v17 = vsub.f32 0.0, %v306_v7  ;;  %v291_v18 = vmul.f32 %v656_v26, %v271_v8  ;;  %v292_v19 = vmul.f32 %v656_v26, %v272_v9 }
 0x126   :  { %434 = vpow2.f32 %v339_v14  ;;  %v232_v12 = vpop.permute.xlu1 %231  ;;  %v237_v13 = vpop.permute.xlu0 %236 }
 0x127   :  { %436 = vpow2.f32 %v341_v10  ;;  %v343_v21 = vmul.f32 1.442695, %v321_v11  ;;  %v345_v22 = vmul.f32 1.442695, %v322_v17  ;;  %v307_v23 = vmul.f32 %v291_v18, %v291_v18 }
 0x128   :  { %v308_v15 = vmul.f32 %v292_v19, %v292_v19  ;;  %v273_v16 = vsub.f32 %v232_v12, %v654_v25  ;;  %v274_v27 = vsub.f32 %v237_v13, %v654_v25 }
 0x129   :  { %438 = vpow2.f32 %v343_v21  ;;  %v323_v28 = vsub.f32 0.0, %v307_v23 }
 0x12a   :  { %v427_v29 = vpop.eup %426  ;;  %440 = vpow2.f32 %v345_v22  ;;  %v324_v30 = vsub.f32 0.0, %v308_v15  ;;  %v293_v24 = vmul.f32 %v656_v26, %v273_v16  ;;  %v294_v31 = vmul.f32 %v656_v26, %v274_v27  ;;  %v242_v32 = vpop.permute.xlu1 %241 }
 0x12b   :  { %v247_v33 = vpop.permute.xlu0 %246  ;;  %v429_v34 = vpop.eup %428  ;;  %v368_v35 = vmul.f32 %v427_v29, %v678_v20  ;;  %v347_v36 = vmul.f32 1.442695, %v323_v28  ;;  %v275_v37 = vsub.f32 %v242_v32, %v654_v25 }
 0x12c   :  { %v276_v38 = vsub.f32 %v247_v33, %v654_v25  ;;  %v367_v39 = vmul.f32 %v429_v34, %v678_v20  ;;  %v349_v40 = vmul.f32 1.442695, %v324_v30  ;;  %v309_v41 = vmul.f32 %v293_v24, %v293_v24 }
 0x12d   :  { %v310_v42 = vmul.f32 %v294_v31, %v294_v31  ;;  %384 = vst [vmem:[#allocation2 + $0x8] sm:$0xff] %v368_v35  ;;  %442 = vpow2.f32 %v347_v36  ;;  %v295_v43 = vmul.f32 %v656_v26, %v275_v37 }
 0x12e   :  { %v296_v44 = vmul.f32 %v656_v26, %v276_v38  ;;  %v431_v45 = vpop.eup %430  ;;  %383 = vst [vmem:[#allocation2] sm:$0xff] %v367_v39  ;;  %444 = vpow2.f32 %v349_v40  ;;  %v325_v46 = vsub.f32 0.0, %v309_v41  ;;  %v252_v48 = vpop.permute.xlu1 %251 }
 0x12f   :  { %v326_v47 = vsub.f32 0.0, %v310_v42  ;;  %v257_v49 = vpop.permute.xlu0 %256  ;;  %v433_v50 = vpop.eup %432  ;;  %v369_v51 = vmul.f32 %v431_v45, %v678_v20  ;;  %v311_v52 = vmul.f32 %v295_v43, %v295_v43  ;;  %v277_v54 = vsub.f32 %v252_v48, %v654_v25 }
 0x130   :  { %v312_v53 = vmul.f32 %v296_v44, %v296_v44  ;;  %v370_v55 = vmul.f32 %v433_v50, %v678_v20  ;;  %v351_v56 = vmul.f32 1.442695, %v325_v46  ;;  %v278_v58 = vsub.f32 %v257_v49, %v654_v25 }
 0x131   :  { %v353_v57 = vmul.f32 1.442695, %v326_v47  ;;  %385 = vst [vmem:[#allocation2 + $0x10] sm:$0xff] %v369_v51  ;;  %v327_v59 = vsub.f32 0.0, %v311_v52  ;;  %v297_v61 = vmul.f32 %v656_v26, %v277_v54 }
 0x132   :  { %v328_v60 = vsub.f32 0.0, %v312_v53  ;;  %386 = vst [vmem:[#allocation2 + $0x18] sm:$0xff] %v370_v55  ;;  %446 = vpow2.f32 %v351_v56  ;;  %v298_v62 = vmul.f32 %v656_v26, %v278_v58 }
 0x133   :  { %v435_v63 = vpop.eup %434  ;;  %448 = vpow2.f32 %v353_v57  ;;  %v355_v0 = vmul.f32 1.442695, %v327_v59  ;;  %v313_v2 = vmul.f32 %v297_v61, %v297_v61 }
 0x134   :  { %v357_v1 = vmul.f32 1.442695, %v328_v60  ;;  %v437_v3 = vpop.eup %436  ;;  %v371_v4 = vmul.f32 %v435_v63, %v678_v20  ;;  %v314_v5 = vmul.f32 %v298_v62, %v298_v62 }
 0x135   :  { %v372_v25 = vmul.f32 %v437_v3, %v678_v20  ;;  %450 = vpow2.f32 %v355_v0  ;;  %v329_v6 = vsub.f32 0.0, %v313_v2 }
 0x136   :  { %v439_v7 = vpop.eup %438  ;;  %387 = vst [vmem:[#allocation2 + $0x20] sm:$0xff] %v371_v4  ;;  %452 = vpow2.f32 %v357_v1  ;;  %v330_v8 = vsub.f32 0.0, %v314_v5 }
 0x137   :  { %v441_v9 = vpop.eup %440  ;;  %388 = vst [vmem:[#allocation2 + $0x28] sm:$0xff] %v372_v25  ;;  %v373_v26 = vmul.f32 %v439_v7, %v678_v20  ;;  %v359_v14 = vmul.f32 1.442695, %v329_v6 }
 0x138   :  { %v374_v10 = vmul.f32 %v441_v9, %v678_v20  ;;  %v361_v11 = vmul.f32 1.442695, %v330_v8 }
 0x139   :  { %389 = vst [vmem:[#allocation2 + $0x30] sm:$0xff] %v373_v26  ;;  %454 = vpow2.f32 %v359_v14 }
 0x13a   :  { %v443_v17 = vpop.eup %442  ;;  %390 = vst [vmem:[#allocation2 + $0x38] sm:$0xff] %v374_v10  ;;  %456 = vpow2.f32 %v361_v11 }
 0x13b   :  { %v445_v18 = vpop.eup %444  ;;  %v375_v19 = vmul.f32 %v443_v17, %v678_v20 }
 0x13c   :  { %v376_v12 = vmul.f32 %v445_v18, %v678_v20 }
 0x13d   :  { %391 = vst [vmem:[#allocation2 + $0x40] sm:$0xff] %v375_v19 }
 0x13e   :  { %392 = vst [vmem:[#allocation2 + $0x48] sm:$0xff] %v376_v12 }
 0x13f   :  { %v447_v13 = vpop.eup %446 }
 0x140   :  { %v449_v21 = vpop.eup %448  ;;  %v377_v22 = vmul.f32 %v447_v13, %v678_v20 }
 0x141   :  { %v378_v23 = vmul.f32 %v449_v21, %v678_v20 }
 0x142   :  { %v451_v15 = vpop.eup %450  ;;  %393 = vst [vmem:[#allocation2 + $0x50] sm:$0xff] %v377_v22 }
 0x143   :  { %v453_v16 = vpop.eup %452  ;;  %394 = vst [vmem:[#allocation2 + $0x58] sm:$0xff] %v378_v23  ;;  %v379_v27 = vmul.f32 %v451_v15, %v678_v20 }
 0x144   :  { %v380_v28 = vmul.f32 %v453_v16, %v678_v20 }
 0x145   :  { %395 = vst [vmem:[#allocation2 + $0x60] sm:$0xff] %v379_v27 }
 0x146   :  { %v455_v29 = vpop.eup %454  ;;  %396 = vst [vmem:[#allocation2 + $0x68] sm:$0xff] %v380_v28 }
 0x147   :  { %v457_v30 = vpop.eup %456  ;;  %v381_v24 = vmul.f32 %v455_v29, %v678_v20 }
 0x148   :  { %v382_v31 = vmul.f32 %v457_v30, %v678_v20 }
 0x149   :  { %397 = vst [vmem:[#allocation2 + $0x70] sm:$0xff] %v381_v24 }
 0x14a   :  { %398 = vst [vmem:[#allocation2 + $0x78] sm:$0xff] %v382_v31 }
 0x14b   :  { %469 = shalt.err (!%p466_p4)
}
 0x14c   :  { %s484_s20 = smov 128   ;;  %s485_s21 = smov 8  }
 0x14d   :  { %410 = dma.vmem_to_hbm [thread:$0]  %s405_s18, 2048, %s713_s2, [#allocation3], %s484_s20, %s484_s20, %s485_s21  }
 0x14e   :  { %478 = dma.done.wait [#allocation3], 2048  }
 0x14f   :  { %479 = vsyncadd [#allocation3], 4294965248 }
 0x150   :  { %414 = vsyncpa [#allocation3], 1 }

</bundles_post_ra>
